<compile_context>
chip_gen: v5e
topology: v5e:2x2
jax: 0.10.0
libtpu: 0.0.40
codegen_flags: <defaults>
</compile_context>

<pallas_src>
import functools
import math

import jax
import jax.numpy as jnp
from jax import lax
from jax.experimental import pallas as pl
from jax.experimental.pallas import tpu as pltpu


_LANE = 128
_VMEM_LIMIT_BYTES = 32 * 1024 * 1024     # requested scoped VMEM (safe on v5e/v6e/v7x)
_FUSED_SLAB_BYTES = 6 * 1024 * 1024      # per-image slab budget (f32 bytes) for fusion
_TILED_BLOCK_BYTES = 3 * 1024 * 1024     # per-block budget for the tiled fallback


def _round_down_to(x, m):
    return (x // m) * m


# ------------------------- shared in-kernel helpers -------------------------

def _channel_attention(y_sum, w_ref, *, inv_hw, k, pad, c):
    """sigmoid(Conv1d(1,1,k,padding=pad,bias=False)(channel means)).

    y_sum: (C, 1) f32 per-channel spatial sums (channels on the sublane axis).
    The conv is expressed as k shifted adds: z[ch] = sum_j w[j] * y[ch + j - pad],
    with pltpu.roll providing the shift and an iota edge mask providing the implicit
    zero padding.  O(C*k) VPU/XLU work, no MXU, no O(C^2) temporaries.
    """
    y = y_sum * inv_hw                                       # (C, 1) channel means
    ch = lax.broadcasted_iota(jnp.int32, (c, 1), 0)          # output channel index
    z = jnp.zeros((c, 1), jnp.float32)
    for j in range(k):                                       # k is a static Python int
        d = j - pad                                          # z[ch] += w[j] * y[ch + d]
        if d == 0:
            z = z + w_ref[j] * y
        else:
            shifted = pltpu.roll(y, shift=(-d) % c, axis=0)  # shifted[ch] = y[(ch+d)%C]
            valid = jnp.logical_and(ch + d >= 0, ch + d < c) # zero padding at the edges
            z = z + w_ref[j] * jnp.where(valid, shifted, 0.0)
    return jax.nn.sigmoid(z)                                 # (C, 1) f32


# ------------------------------ Pallas kernels ------------------------------

def _eca_fused_kernel(x_ref, w_ref, o_ref, *, inv_hw, k, pad, c):
    """Single pass per image: pool + channel conv + sigmoid + rescale, x slab resident."""
    x = x_ref[0]                                             # (C, HW)
    y_sum = jnp.sum(x.astype(jnp.float32), axis=-1, keepdims=True)
    attn = _channel_attention(y_sum, w_ref, inv_hw=inv_hw, k=k, pad=pad, c=c)
    # Multiply in the input dtype (native bf16 on v6e/v7x); pooling/attn stayed f32.
    o_ref[0] = (x * attn.astype(x.dtype)).astype(o_ref.dtype)


def _eca_pool_attn_kernel(x_ref, w_ref, attn_ref, *,
                          inv_hw, k, pad, c, hw, ts, masked):
    """Fallback pass 1: partial-sum global average pool over spatial tiles; on the last
    tile the channel conv + sigmoid run in-kernel, producing the (1, C, 1) attention."""
    si = pl.program_id(1)

    @pl.when(si == 0)
    def _init():
        attn_ref[...] = jnp.zeros_like(attn_ref)

    x = x_ref[0].astype(jnp.float32)                         # (C, ts)
    if masked:
        # Last spatial tile may overhang H*W; zero the out-of-range lanes before summing.
        lane = lax.broadcasted_iota(jnp.int32, (c, ts), 1) + si * ts
        x = jnp.where(lane < hw, x, 0.0)
    attn_ref[0] += jnp.sum(x, axis=-1, keepdims=True)

    @pl.when(si == pl.num_programs(1) - 1)
    def _finalize():
        attn_ref[0] = _channel_attention(attn_ref[0], w_ref,
                                         inv_hw=inv_hw, k=k, pad=pad, c=c)


def _eca_scale_kernel(x_ref, attn_ref, o_ref):
    """Fallback pass 2: x * attn, broadcast along spatial lanes.  Out-of-range lanes of a
    ragged last tile are dropped by Pallas on writeback."""
    x = x_ref[...]
    o_ref[...] = (x * attn_ref[...].astype(x.dtype)).astype(o_ref.dtype)


# ------------------------------ JAX wrapper ---------------------------------

def _fallback_tile(hw, c, itemsize):
    """Spatial tile for the tiled path: largest multiple of 128 whose pass-2 working set
    (double-buffered x in + x out + attn) stays inside the per-block VMEM budget."""
    if hw <= _LANE:
        return hw                                            # full (tiny) spatial extent
    ts = _TILED_BLOCK_BYTES // max(1, c * itemsize)
    ts = min(max(ts, _LANE), 8192)
    ts = max(_round_down_to(ts, _LANE), _LANE)
    # Never tile wider than the spatial extent (keeps the last-block overhang < 128 lanes).
    return min(ts, _round_down_to(hw, _LANE))


def eca_layer_forward(x_nchw, conv_w, *, fused_slab_bytes=_FUSED_SLAB_BYTES):
    """ECA layer forward. x_nchw: (N, C, H, W); conv_w: PyTorch Conv1d weight (1, 1, k)."""
    n, c, h, w = x_nchw.shape
    hw = h * w
    wk = jnp.asarray(conv_w, jnp.float32).reshape(-1)        # (k,)
    k = int(wk.shape[0])
    pad = (k - 1) // 2
    xr = x_nchw.reshape(n, c, hw)                            # free reshape, stays NCHW
    itemsize = int(jnp.dtype(x_nchw.dtype).itemsize)
    inv_hw = 1.0 / float(hw)

    # Fusion budget measured in f32 bytes (covers the f32 pooling temp for bf16 inputs):
    # double-buffered in + out <= 4 * slab <= 24 MiB under the 32 MiB scoped limit.
    slab_f32 = c * hw * 4

    if slab_f32 <= fused_slab_bytes:
        # -------- fused single pass: pool + conv + sigmoid + rescale --------
        out = pl.pallas_call(
            functools.partial(_eca_fused_kernel, inv_hw=inv_hw, k=k, pad=pad, c=c),
            out_shape=jax.ShapeDtypeStruct((n, c, hw), x_nchw.dtype),
            grid=(n,),
            in_specs=[pl.BlockSpec((1, c, hw), lambda i: (i, 0, 0)),
                      pl.BlockSpec(memory_space=pltpu.MemorySpace.SMEM)],
            out_specs=pl.BlockSpec((1, c, hw), lambda i: (i, 0, 0)),
            compiler_params=pltpu.CompilerParams(
                dimension_semantics=("parallel",),
                vmem_limit_bytes=_VMEM_LIMIT_BYTES),
            cost_estimate=pl.CostEstimate(
                flops=2 * n * c * hw + 2 * n * c * k,
                transcendentals=n * c,
                bytes_accessed=2 * n * c * hw * itemsize + k * 4),
        )(xr, wk)
        return out.reshape(n, c, h, w)

    # -------- tiled two-pass fallback (slab too large to keep resident) --------
    ts = _fallback_tile(hw, c, itemsize)
    s_tiles = pl.cdiv(hw, ts)
    masked = (hw % ts) != 0

    # TODO(synk): for v7x at N=1, split the pass-1 spatial reduction two-level so both
    # TensorCores participate (pass 2 already shards via the parallel batch/spatial axes).
    attn = pl.pallas_call(
        functools.partial(_eca_pool_attn_kernel, inv_hw=inv_hw, k=k, pad=pad,
                          c=c, hw=hw, ts=ts, masked=masked),
        out_shape=jax.ShapeDtypeStruct((n, c, 1), jnp.float32),
        grid=(n, s_tiles),
        in_specs=[pl.BlockSpec((1, c, ts), lambda i, s: (i, 0, s)),
                  pl.BlockSpec(memory_space=pltpu.MemorySpace.SMEM)],
        out_specs=pl.BlockSpec((1, c, 1), lambda i, s: (i, 0, 0)),
        compiler_params=pltpu.CompilerParams(
            dimension_semantics=("parallel", "arbitrary"),
            vmem_limit_bytes=_VMEM_LIMIT_BYTES),
        cost_estimate=pl.CostEstimate(
            flops=n * c * hw + 2 * n * c * k,
            transcendentals=n * c,
            bytes_accessed=n * c * hw * itemsize + n * c * 4 + k * 4),
    )(xr, wk)

    out = pl.pallas_call(
        _eca_scale_kernel,
        out_shape=jax.ShapeDtypeStruct((n, c, hw), x_nchw.dtype),
        grid=(n, s_tiles),
        in_specs=[pl.BlockSpec((1, c, ts), lambda i, s: (i, 0, s)),
                  pl.BlockSpec((1, c, 1), lambda i, s: (i, 0, 0))],
        out_specs=pl.BlockSpec((1, c, ts), lambda i, s: (i, 0, s)),
        compiler_params=pltpu.CompilerParams(
            dimension_semantics=("parallel", "parallel"),
            vmem_limit_bytes=_VMEM_LIMIT_BYTES),
        cost_estimate=pl.CostEstimate(
            flops=n * c * hw,
            transcendentals=0,
            bytes_accessed=2 * n * c * hw * itemsize + n * c * 4),
    )(xr, attn)
    return out.reshape(n, c, h, w)


# ----------------------------- Pure-JAX reference ---------------------------

def eca_layer_reference(x, conv_w):
    n, c, h, w = x.shape
    wk = jnp.asarray(conv_w, jnp.float32).reshape(-1)
    k = int(wk.shape[0])
    pad = (k - 1) // 2
    y = jnp.mean(x.astype(jnp.float32), axis=(2, 3))         # (N, C)
    yp = jnp.pad(y, ((0, 0), (pad, pad)))
    z = sum(wk[j] * yp[:, j:j + c] for j in range(k))
    s = jax.nn.sigmoid(z)
    return (x * s[:, :, None, None].astype(x.dtype)).astype(x.dtype)


if __name__ == "__main__":
    key = jax.random.PRNGKey(0)
    kx, kw = jax.random.split(key)

    N, C, H, W = 2, 64, 16, 16                 # small NCHW feature map, k_size = 3
    K = 3
    x = jax.random.normal(kx, (N, C, H, W), jnp.float32)
    bound = 1.0 / math.sqrt(K)                 # PyTorch Conv1d(1,1,3,bias=False) init range
    conv_w = jax.random.uniform(kw, (1, 1, K), jnp.float32, minval=-bound, maxval=bound)

    ref = jax.block_until_ready(eca_layer_reference(x, conv_w))

    # Fused single-pass path (typical ECA feature maps fit the per-image VMEM budget).
    out_fused = jax.block_until_ready(eca_layer_forward(x, conv_w))
    assert out_fused.shape == x.shape, out_fused.shape
    assert bool(jnp.all(jnp.isfinite(out_fused)))
    assert bool(jnp.allclose(out_fused, ref, rtol=5e-3, atol=5e-3)), \
        float(jnp.max(jnp.abs(out_fused - ref)))

    # Tiled two-pass fallback (forced), used for slabs too large to keep resident.
    out_tiled = jax.block_until_ready(eca_layer_forward(x, conv_w, fused_slab_bytes=0))
    assert bool(jnp.allclose(out_tiled, ref, rtol=5e-3, atol=5e-3)), \
        float(jnp.max(jnp.abs(out_tiled - ref)))

    # Ragged spatial extent (H*W not a multiple of 128) through the fused path.
    x2 = jax.random.normal(kx, (N, C, 9, 9), jnp.float32)
    ref2 = jax.block_until_ready(eca_layer_reference(x2, conv_w))
    out2 = jax.block_until_ready(eca_layer_forward(x2, conv_w))
    assert bool(jnp.allclose(out2, ref2, rtol=5e-3, atol=5e-3)), \
        float(jnp.max(jnp.abs(out2 - ref2)))

    print("KERNEL_OK")
</pallas_src>

<mosaic_0001>
module attributes {stable_mosaic.version = 11 : i64} {
  func.func @_eca_fused_kernel(%arg0: i32, %arg1: memref<1x64x256xf32, #tpu.memory_space<vmem>>, %arg2: memref<3xf32, #tpu.memory_space<smem>>, %arg3: memref<1x64x256xf32, #tpu.memory_space<vmem>>) attributes {dimension_semantics = [#tpu.dimension_semantics<parallel>], iteration_bounds = array<i64: 2>, scalar_prefetch = 0 : i64, scratch_operands = 0 : i64, tpu.core_type = #tpu.core_type<tc>, window_params = [{transform_indices = @transform_0, window_bounds = array<i64: 1, 64, 256>}, {transform_indices = @transform_1, window_bounds = array<i64: 3>}, {transform_indices = @transform_2, window_bounds = array<i64: 1, 64, 256>}]} {
    %c0 = arith.constant 0 : index
    %c0_0 = arith.constant 0 : index
    %c0_1 = arith.constant 0 : index
    %0 = vector.load %arg1[%c0, %c0_0, %c0_1] : memref<1x64x256xf32, #tpu.memory_space<vmem>>, vector<1x64x256xf32>
    %1 = vector.shape_cast %0 : vector<1x64x256xf32> to vector<64x256xf32>
    %cst = arith.constant dense<0.000000e+00> : vector<64xf32>
    %2 = vector.multi_reduction <add>, %1, %cst [1] : vector<64x256xf32> to vector<64xf32>
    %3 = vector.shape_cast %2 : vector<64xf32> to vector<64x1xf32>
    %cst_2 = arith.constant 3.906250e-03 : f32
    %4 = vector.broadcast %cst_2 : f32 to vector<64x1xf32>
    %5 = arith.mulf %3, %4 : vector<64x1xf32>
    %6 = tpu.iota {dimensions = array<i32: 0>} : vector<64x1xi32>
    %cst_3 = arith.constant 0.000000e+00 : f32
    %7 = vector.broadcast %cst_3 : f32 to vector<64x1xf32>
    %c1_i32 = arith.constant 1 : i32
    %8 = tpu.dynamic_rotate %5 by %c1_i32 dim 0 : vector<64x1xf32>, i32 -> vector<64x1xf32>
    %c-1_i32 = arith.constant -1 : i32
    %9 = vector.broadcast %c-1_i32 : i32 to vector<64x1xi32>
    %10 = arith.addi %6, %9 : vector<64x1xi32>
    %c0_i32 = arith.constant 0 : i32
    %11 = vector.broadcast %c0_i32 : i32 to vector<64x1xi32>
    %12 = arith.cmpi sge, %10, %11 : vector<64x1xi32>
    %c-1_i32_4 = arith.constant -1 : i32
    %13 = vector.broadcast %c-1_i32_4 : i32 to vector<64x1xi32>
    %14 = arith.addi %6, %13 : vector<64x1xi32>
    %c64_i32 = arith.constant 64 : i32
    %15 = vector.broadcast %c64_i32 : i32 to vector<64x1xi32>
    %16 = arith.cmpi slt, %14, %15 : vector<64x1xi32>
    %17 = arith.andi %12, %16 : vector<64x1xi1>
    %c0_5 = arith.constant 0 : index
    %18 = memref.load %arg2[%c0_5] : memref<3xf32, #tpu.memory_space<smem>>
    %cst_6 = arith.constant 0.000000e+00 : f32
    %19 = vector.broadcast %cst_6 : f32 to vector<64x1xf32>
    %20 = arith.select %17, %8, %19 : vector<64x1xi1>, vector<64x1xf32>
    %21 = vector.broadcast %18 : f32 to vector<64x1xf32>
    %22 = arith.mulf %21, %20 : vector<64x1xf32>
    %23 = arith.addf %7, %22 : vector<64x1xf32>
    %c1 = arith.constant 1 : index
    %24 = memref.load %arg2[%c1] : memref<3xf32, #tpu.memory_space<smem>>
    %25 = vector.broadcast %24 : f32 to vector<64x1xf32>
    %26 = arith.mulf %25, %5 : vector<64x1xf32>
    %27 = arith.addf %23, %26 : vector<64x1xf32>
    %c63_i32 = arith.constant 63 : i32
    %28 = tpu.dynamic_rotate %5 by %c63_i32 dim 0 : vector<64x1xf32>, i32 -> vector<64x1xf32>
    %c1_i32_7 = arith.constant 1 : i32
    %29 = vector.broadcast %c1_i32_7 : i32 to vector<64x1xi32>
    %30 = arith.addi %6, %29 : vector<64x1xi32>
    %c0_i32_8 = arith.constant 0 : i32
    %31 = vector.broadcast %c0_i32_8 : i32 to vector<64x1xi32>
    %32 = arith.cmpi sge, %30, %31 : vector<64x1xi32>
    %c1_i32_9 = arith.constant 1 : i32
    %33 = vector.broadcast %c1_i32_9 : i32 to vector<64x1xi32>
    %34 = arith.addi %6, %33 : vector<64x1xi32>
    %c64_i32_10 = arith.constant 64 : i32
    %35 = vector.broadcast %c64_i32_10 : i32 to vector<64x1xi32>
    %36 = arith.cmpi slt, %34, %35 : vector<64x1xi32>
    %37 = arith.andi %32, %36 : vector<64x1xi1>
    %c2 = arith.constant 2 : index
    %38 = memref.load %arg2[%c2] : memref<3xf32, #tpu.memory_space<smem>>
    %cst_11 = arith.constant 0.000000e+00 : f32
    %39 = vector.broadcast %cst_11 : f32 to vector<64x1xf32>
    %40 = arith.select %37, %28, %39 : vector<64x1xi1>, vector<64x1xf32>
    %41 = vector.broadcast %38 : f32 to vector<64x1xf32>
    %42 = arith.mulf %41, %40 : vector<64x1xf32>
    %43 = arith.addf %27, %42 : vector<64x1xf32>
    %44 = arith.negf %43 : vector<64x1xf32>
    %45 = math.exp %44 : vector<64x1xf32>
    %cst_12 = arith.constant 1.000000e+00 : f32
    %46 = vector.broadcast %cst_12 : f32 to vector<64x1xf32>
    %47 = arith.addf %46, %45 : vector<64x1xf32>
    %48 = arith.divf %46, %47 : vector<64x1xf32>
    %49 = vector.broadcast %48 : vector<64x1xf32> to vector<64x256xf32>
    %50 = arith.mulf %1, %49 : vector<64x256xf32>
    %c0_13 = arith.constant 0 : index
    %c0_14 = arith.constant 0 : index
    %c0_15 = arith.constant 0 : index
    %51 = vector.load %arg3[%c0_13, %c0_14, %c0_15] : memref<1x64x256xf32, #tpu.memory_space<vmem>>, vector<1x64x256xf32>
    %52 = vector.shape_cast %51 : vector<1x64x256xf32> to vector<64x256xf32>
    %53 = vector.shape_cast %50 : vector<64x256xf32> to vector<1x64x256xf32>
    tpu.vector_store %arg3[%c0_13, %c0_14, %c0_15], %53 {strides = array<i32>} : memref<1x64x256xf32, #tpu.memory_space<vmem>>, vector<1x64x256xf32>,
    return
  }
  func.func @transform_0(%arg0: i32) -> (i32, i32, i32) {
    %c0_i32 = arith.constant 0 : i32
    %c0_i32_0 = arith.constant 0 : i32
    %c0_i32_1 = arith.constant 0 : i32
    return %arg0, %c0_i32, %c0_i32_0 : i32, i32, i32
  }
  func.func @transform_1(%arg0: i32) -> i32 {
    %c0_i32 = arith.constant 0 : i32
    %c0_i32_0 = arith.constant 0 : i32
    return %c0_i32 : i32
  }
  func.func @transform_2(%arg0: i32) -> (i32, i32, i32) {
    %c0_i32 = arith.constant 0 : i32
    %c0_i32_0 = arith.constant 0 : i32
    %c0_i32_1 = arith.constant 0 : i32
    return %arg0, %c0_i32, %c0_i32_0 : i32, i32, i32
  }
}

</mosaic_0001>

<bundles_post_ra>
// kernel: tpu_custom_call.1
= control target key start
LH: loop header
LB: loop body
LE: loop exit
PB: predicated region body
PF: predicated region fallthrough
CT: control target
= control target key end

     0   :  { %7 = vsyncpa [#allocation3], 0  ;;  %s1375_s0 = inlined_call_operand.hbm [shape: f32[2,64,256], index: 0, kind: input, shape index: {}]   ;;  %s1376_s1 = inlined_call_operand.hbm [shape: f32[3], index: 1, kind: input, shape index: {}]   ;;  %s1377_s2 = inlined_call_operand.hbm [shape: f32[2,64,256], index: 2, kind: output, shape index: {}]  }
   0x1   :  { %9 = vsyncpa [#allocation3 + $0x1], 0 }
   0x2   :  { %10 = vsyncpa [#allocation5], 0 }
   0x3   :  { %11 = vsyncpa [#allocation4], 0 }
   0x4   :  { %13 = vsyncpa [#allocation4 + $0x1], 0  ;;  %s991_s9 = smov 0   ;;  %s993_s10 = smov 0  }
   0x5   :  { %s995_s11 = smov 0   ;;  %s997_s12 = smov 0  }
   0x6 LB: > { %s1012_s13 = sadd.s32 4294967295, %s968_s12   ;;  %s728_s14 = sadd.s32 4294967294, %s968_s12   ;;  %s968_s12 = sphi %s997_s12, %s1388_s12   ;;  %s964_s11 = sphi %s995_s11, %s1387_s11   ;;  %s960_s10 = sphi %s993_s10, %s1386_s10   ;;  %s956_s9 = sphi %s991_s9, %s1385_s9  }
   0x7   : > { %s1016_s15 = sadd.s32 1, %s968_s12   ;;  %s26_s16 = sadd.s32 1, %s964_s11 }
   0x8   : > { %s23_s17 = ssub.s32 %s968_s12, %s1016_s15  ;;  %p33_p0 = scmp.ne.s32.totalorder %s964_s11, %s960_s10 }
   0x9   : > { %p24_p1 = scmp.eq.s32.totalorder %s23_s17, 0  ;;  %p34_p2 = scmp.eq.s32.totalorder %s968_s12, 0 }
   0xa   : > { %p39_p3 = scmp.ne.s32.totalorder %s960_s10, %s956_s9  ;;  %p40_p4 = scmp.eq.s32.totalorder %s1012_s13, 0 }
   0xb   : > { %s1028_s18 = scalar_select %p24_p1, %s964_s11, %s26_s16  }
   0xc   : > { %p1030_p5 = por %p34_p2, %p33_p0  ;;  %p1036_p6 = por %p40_p4, %p39_p3 }
   0xd   : > { %p84_p7 = scmp.eq.s32.totalorder %s1012_s13, 1  ;;  %p90_p8 = scmp.eq.s32.totalorder %s728_s14, 1 }
   0xe   : > { %p729_p9 = scmp.ge.s32.totalorder %s968_s12, 1  ;;  %p97_p10 = scmp.lt.s32.totalorder %s968_s12, 3 }
   0xf   : > { %p1043_p11 = por %p84_p7, %p33_p0  ;;  %p1047_p12 = por %p90_p8, %p39_p3 }
  0x10   : > { %p1051_p13 = pnand %p729_p9, %p97_p10  ;;  %s109_s26 = sshll.u32 %s1376_s1, 4  ;;  %s110_s26 = int_to_ptr.hbm [resolvable:$true] %s109_s26 }
  0x11   : > { %p777_p2 = scmp.lt.s32.totalorder %s968_s12, 2  ;;  %s120_s27 = sand.u32 1, %s964_s11  }
  0x12   : > { %p764_p1 = pneg %p1051_p13  ;;  %s732_s29 = sshll.u32 %s120_s27, 7 }
  0x13   : > { %p1067_p3 = pnand %p777_p2, %p1030_p5  ;;  %s970_s30 = smov [#allocation6]  }
  0x14   : > { %p765_p7 = pnand %p764_p1, %p40_p4  ;;  %s754_s3 = sshll.u32 %s968_s12, 7 }
  0x15   : > { %s124_s4 = scalar_lea.vmem [#allocation2], %s732_s29  ;;  %s129_s8 = scalar_lea.hbm %s1375_s0, %s754_s3 }
  0x16   : > { %767 = dma.hbm_to_smem (!%p765_p7), %s110_s26, 16, %s970_s30, [#allocation5]  }
  0x17   : > { %s132_s5 = sshll.u32 %s124_s4, 4  ;;  %s130_s14 = sshll.u32 %s129_s8, 4  ;;  %s133_s5 = int_to_ptr.vmem [resolvable:$true] %s132_s5  ;;  %s131_s14 = int_to_ptr.hbm [resolvable:$true] %s130_s14 }
  0x18   : > { %s121_s16 = scalar_lea.sflag [#allocation3], %s120_s27  ;;  %s868_s17 = sshra.s32 %s131_s14, 4  ;;  %s869_s17 = int_to_ptr.hbm [resolvable:$true] %s868_s17 }
  0x19   : > { %s870_s19 = scalar_lea.hbm %s869_s17, 128  ;;  %p872_p8 = pneg %p1067_p3 }
  0x1a   : > { %p871_p5 = scmp.ne.s32.totalorder %s869_s17, %s870_s19  ;;  %s875_s26 = scalar_lea.hbm %s1375_s0, 256 }
  0x1b   : > { %p876_p1 = scmp.lt.s32.totalorder %s869_s17, %s1375_s0  ;;  %p877_p2 = scmp.lt.s32.totalorder %s875_s26, %s870_s19 }
  0x1c   : > { %p873_p9 = pnand %p872_p8, %p871_p5 }
  0x1d   : > { %p878_p7 = por %p877_p2, %p876_p1 }
  0x1e   : > { %p874_p10 = pneg %p873_p9 }
  0x20   : > { %p879_p0 = pnand %p878_p7, %p874_p10 }
  0x22   : > { %882 = shalt.err (!%p879_p0)
}
  0x23   : > { %s971_s27 = smov 256   ;;  %s972_s3 = smov 16  }
  0x24   : > { %771 = dma.hbm_to_vmem [thread:$0]  (!%p1067_p3), %s131_s14, 2048, %s133_s5, %s121_s16, %s971_s27, %s971_s27, %s972_s3  }
  0x25   : > { %144 = sbr.rel (%p1051_p13) target bundleno = 354 (0x162), region = 28  ;;  %s1088_s4 = sand.u32 (!%p1051_p13), 1, %s960_s10  }
  0x26   : > { %s736_s6 = sshll.u32 (!%p1051_p13), %s1088_s4, 7  ;;  %s147_s7 = scalar_lea.sflag (!%p1051_p13), [#allocation3], %s1088_s4 }
  0x27   : > { %s1094_s8 = scalar_lea.vmem (!%p1051_p13), [#allocation2], %s736_s6 }
  0x2a   : > { %943 = dma.done.wait (%p1036_p6), %s147_s7, 2048  }
  0x2b   : > { %945 = vsyncadd (%p1036_p6), %s147_s7, 4294965248 }
  0x2c   : > { %947 = dma.done.wait (%p40_p4), [#allocation5], 16  }
  0x2d   : > { %949 = vsyncadd (%p40_p4), [#allocation5], 4294967280 }
  0x2e   : > { %161 = sfence }
  0x2f   : > { %v1105_v0 = vld [vmem:[%s1094_s8 + $0x30] sm:$0xff]  ;;  %v1108_v1 = vld [vmem:[%s1094_s8 + $0x38] sm:$0xff]  ;;  %v1119_v5 = vld [vmem:[%s1094_s8] sm:$0xff]  ;;  %v226_v24 = vlaneseq  ;;  %s284_s20 = sld [smem:[#allocation6]]  ;;  %s1309_s5 = scalar_lea.vmem [#allocation7], %s736_s6 }
  0x30   : > { %v1111_v2 = vld [vmem:[%s1094_s8 + $0x10] sm:$0xff]  ;;  %v203_v3 = vadd.f32 %v1108_v1, %v1105_v0  ;;  %v1116_v4 = vld [vmem:[%s1094_s8 + $0x18] sm:$0xff]  ;;  %v1122_v6 = vld [vmem:[%s1094_s8 + $0x8] sm:$0xff]  ;;  %s739_s23 = sld [smem:[#allocation6 + $0x1]]  ;;  %s755_s14 = sshll.u32 %s1012_s13, 7 }
  0x31   : > { %v197_v7 = vadd.f32 %v1116_v4, %v1111_v2  ;;  %v194_v8 = vadd.f32 %v1122_v6, %v1119_v5  ;;  %v1129_v9 = vld [vmem:[%s1094_s8 + $0x40] sm:$0xff]  ;;  %v1132_v10 = vld [vmem:[%s1094_s8 + $0x48] sm:$0xff]  ;;  %v1141_v13 = vld [vmem:[%s1094_s8 + $0x70] sm:$0xff]  ;;  %v1168_v25 = vshrl.u32 %v226_v24, 7  ;;  %s740_s28 = sld [smem:[#allocation6 + $0x2]]  ;;  %s639_s19 = scalar_lea.hbm %s1377_s2, %s755_s14 }
  0x32   : > { %204 = vadd.xlane.f32.xlu2 %v203_v3  ;;  %v1135_v11 = vld [vmem:[%s1094_s8 + $0x20] sm:$0xff]  ;;  %v1138_v12 = vld [vmem:[%s1094_s8 + $0x28] sm:$0xff]  ;;  %v1144_v14 = vld [vmem:[%s1094_s8 + $0x78] sm:$0xff]  ;;  %v206_v15 = vadd.f32 %v1132_v10, %v1129_v9  ;;  %s640_s24 = sshll.u32 %s1309_s5, 4  ;;  %s642_s25 = sshll.u32 %s639_s19, 4  ;;  %s641_s24 = int_to_ptr.vmem [resolvable:$true] %s640_s24  ;;  %s643_s25 = int_to_ptr.hbm [resolvable:$true] %s642_s25 }
  0x33   : > { %198 = vadd.xlane.f32.xlu1 %v197_v7  ;;  %195 = vadd.xlane.f32.xlu0 %v194_v8  ;;  %v200_v16 = vadd.f32 %v1138_v12, %v1135_v11  ;;  %v215_v17 = vadd.f32 %v1144_v14, %v1141_v13  ;;  %v1153_v18 = vld [vmem:[%s1094_s8 + $0x60] sm:$0xff]  ;;  %v1156_v19 = vld [vmem:[%s1094_s8 + $0x68] sm:$0xff]  ;;  %v1159_v20 = vld [vmem:[%s1094_s8 + $0x50] sm:$0xff]  ;;  %vm243_vm0 = vcmp.lt.s32.totalorder %v1168_v25, 1  ;;  %v234_v31 = vadd.s32 56, %v1168_v25  ;;  %s628_s13 = scalar_lea.sflag [#allocation4], %s1088_s4 }
  0x34   : > { %v1162_v21 = vld [vmem:[%s1094_s8 + $0x58] sm:$0xff]  ;;  %v212_v22 = vadd.f32 %v1156_v19, %v1153_v18  ;;  %vm336_vm1 = vcmp.lt.s32.totalorder %v1168_v25, 7  ;;  %v252_v39 = vadd.s32 4294967295, %v1168_v25  ;;  %s912_s26 = sshra.s32 %s643_s25, 4  ;;  %s918_s3 = scalar_lea.hbm %s1377_s2, 256  ;;  %s913_s26 = int_to_ptr.hbm [resolvable:$true] %s912_s26 }
  0x35   : > { %v209_v23 = vadd.f32 %v1162_v21, %v1159_v20  ;;  %v1172_v36 = vstv %s284_s20  ;;  %v352_v40 = vadd.s32 1, %v234_v31  ;;  %s914_s29 = scalar_lea.hbm %s913_s26, 128  ;;  %p919_p0 = scmp.lt.s32.totalorder %s913_s26, %s1377_s2 }
  0x36   : > { %v1178_v41 = vstv %s739_s23  ;;  %vm260_vm2 = vcmp.ge.s32.totalorder %v252_v39, 0  ;;  %p915_p4 = scmp.ne.s32.totalorder %s913_s26, %s914_s29  ;;  %p920_p3 = scmp.lt.s32.totalorder %s918_s3, %s914_s29 }
  0x37   : > { %v1180_v44 = vstv %s740_s28  ;;  %vm368_vm3 = vcmp.lt.s32.totalorder %v352_v40, 64 }
  0x38   : > { %p916_p6 = pnand %p915_p4, %p1043_p11  ;;  %p921_p5 = por %p920_p3, %p919_p0 }
  0x3a   : > { %207 = vadd.xlane.f32.xlu2 %v206_v15  ;;  %p917_p13 = pneg %p916_p6 }
  0x3b   : > { %201 = vadd.xlane.f32.xlu1 %v200_v16  ;;  %216 = vadd.xlane.f32.xlu0 %v215_v17 }
  0x3c   : > { %p922_p8 = pnand %p921_p5, %p917_p13 }
  0x43   : > { %213 = vadd.xlane.f32.xlu1 %v212_v22  ;;  %210 = vadd.xlane.f32.xlu0 %v209_v23 }
  0xa5   : > { %v205_v26 = vpop.xlane.xlu2 %204 }
  0xa6   : > { %v199_v27 = vpop.xlane.xlu1 %198  ;;  %v196_v28 = vpop.xlane.xlu0 %195  ;;  %v221_v34 = vmul.f32 0.00390625, %v205_v26 }
  0xa7   : > { %v219_v29 = vmul.f32 0.00390625, %v199_v27  ;;  %v218_v30 = vmul.f32 0.00390625, %v196_v28 }
  0xa8   : > { %v331_v43 = vrot.slane %v221_v34, 1  ;;  %v238_v49 = vrot.slane %v221_v34, 7  ;;  %v315_v55 = vmul.f32 %v1178_v41, %v221_v34 }
  0xa9   : > { %v236_v32 = vrot.slane %v219_v29, 7  ;;  %v235_v33 = vrot.slane %v218_v30, 7  ;;  %v329_v35 = vrot.slane %v219_v29, 1  ;;  %v328_v38 = vrot.slane %v218_v30, 1 }
  0xaa   : > { %v313_v53 = vmul.f32 %v1178_v41, %v219_v29  ;;  %v312_v59 = vmul.f32 %v1178_v41, %v218_v30 }
  0xab   : > { %v250_v37 = vsel %vm243_vm0, %v235_v33, %v236_v32  ;;  %v343_v50 = vsel %vm336_vm1, %v328_v38, %v329_v35 }
  0xac   : > { %v295_v45 = vmul.f32 %v1172_v36, %v250_v37  ;;  %v387_v61 = vmul.f32 %v1180_v44, %v343_v50 }
  0xad   : > { %v208_v42 = vpop.xlane.xlu2 %207 }
  0xae   : > { %v1183_v46 = vmul.f32 0.00390625, %v208_v42  ;;  %v202_v47 = vpop.xlane.xlu1 %201  ;;  %v217_v48 = vpop.xlane.xlu0 %216  ;;  %v321_v60 = vadd.f32 %v313_v53, %v295_v45 }
  0xaf   : > { %v220_v51 = vmul.f32 0.00390625, %v202_v47  ;;  %v1187_v52 = vmul.f32 0.00390625, %v217_v48 }
  0xb0   : > { %v332_v54 = vrot.slane %v1183_v46, 1  ;;  %v239_v23 = vrot.slane %v1183_v46, 7 }
  0xb1   : > { %v237_v56 = vrot.slane %v220_v51, 7  ;;  %v330_v57 = vrot.slane %v220_v51, 1  ;;  %v242_v58 = vrot.slane %v1187_v52, 7  ;;  %v314_v7 = vmul.f32 %v1178_v41, %v220_v51 }
  0xb2   : > { %v340_v62 = vsel %vm336_vm1, %v331_v43, %v332_v54  ;;  %v335_v8 = vrot.slane %v1187_v52, 1  ;;  %v247_v39 = vsel %vm243_vm0, %v238_v49, %v239_v23 }
  0xb3   : > { %v248_v63 = vsel %vm243_vm0, %v237_v56, %v238_v49  ;;  %v249_v3 = vsel %vm243_vm0, %v236_v32, %v237_v56  ;;  %v341_v17 = vsel %vm336_vm1, %v330_v57, %v331_v43  ;;  %v342_v22 = vsel %vm336_vm1, %v329_v35, %v330_v57 }
  0xb4   : > { %v296_v15 = vmul.f32 %v1172_v36, %v249_v3  ;;  %v297_v16 = vmul.f32 %v1172_v36, %v248_v63  ;;  %v390_v24 = vmul.f32 %v1180_v44, %v340_v62  ;;  %v388_v26 = vmul.f32 %v1180_v44, %v342_v22 }
  0xb5   : > { %v251_v27 = vsel %vm243_vm0, %v242_v58, %v235_v33  ;;  %v389_v30 = vmul.f32 %v1180_v44, %v341_v17  ;;  %v344_v42 = vsel %vm336_vm1, %v335_v8, %v328_v38  ;;  %v316_v33 = vmul.f32 %v1178_v41, %v1183_v46 }
  0xb6   : > { %v322_v28 = vadd.f32 %v314_v7, %v296_v15  ;;  %v323_v29 = vadd.f32 %v315_v55, %v297_v16  ;;  %v285_v31 = vsel %vm260_vm2, %v251_v27, 0.0  ;;  %v214_v32 = vpop.xlane.xlu1 %213  ;;  %v211_v34 = vpop.xlane.xlu0 %210  ;;  %v396_v37 = vadd.f32 %v388_v26, %v321_v60 }
  0xb7   : > { %v294_v35 = vmul.f32 %v1172_v36, %v285_v31  ;;  %v224_v43 = vmul.f32 0.00390625, %v214_v32  ;;  %v223_v48 = vmul.f32 0.00390625, %v211_v34  ;;  %v319_v56 = vmul.f32 %v1178_v41, %v1187_v52 }
  0xb8   : > { %v397_v45 = vadd.f32 %v389_v30, %v322_v28  ;;  %v398_v47 = vadd.f32 %v390_v24, %v323_v29  ;;  %v742_v50 = vmul.f32 -1.442695, %v396_v37  ;;  %v385_v57 = vsel %vm368_vm3, %v344_v42, 0.0 }
  0xb9   : > { %v320_v51 = vadd.f32 %v312_v59, %v294_v35  ;;  %v241_v53 = vrot.slane %v224_v43, 7  ;;  %v240_v38 = vrot.slane %v223_v48, 7  ;;  %v334_v49 = vrot.slane %v224_v43, 1 }
  0xba   : > { %v743_v55 = vmul.f32 -1.442695, %v397_v45  ;;  %821 = vpow2.f32 %v742_v50  ;;  %v744_v60 = vmul.f32 -1.442695, %v398_v47  ;;  %v298_v7 = vmul.f32 %v1172_v36, %v247_v39 }
  0xbb   : > { %v395_v62 = vadd.f32 %v387_v61, %v320_v51  ;;  %v244_v63 = vsel %vm243_vm0, %v241_v53, %v242_v58  ;;  %v245_v59 = vsel %vm243_vm0, %v240_v38, %v241_v53  ;;  %v394_v15 = vmul.f32 %v1180_v44, %v385_v57 }
  0xbc   : > { %823 = vpow2.f32 %v743_v55  ;;  %v301_v3 = vmul.f32 %v1172_v36, %v244_v63  ;;  %v246_v16 = vsel %vm243_vm0, %v239_v23, %v240_v38  ;;  %v317_v58 = vmul.f32 %v1178_v41, %v223_v48 }
  0xbd   : > { %v741_v40 = vmul.f32 -1.442695, %v395_v62  ;;  %v299_v61 = vmul.f32 %v1172_v36, %v246_v16  ;;  %v333_v22 = vrot.slane %v223_v48, 1  ;;  %825 = vpow2.f32 %v744_v60 }
  0xbe   : > { %v327_v17 = vadd.f32 %v319_v56, %v301_v3  ;;  %v318_v24 = vmul.f32 %v1178_v41, %v224_v43  ;;  %v300_v26 = vmul.f32 %v1172_v36, %v245_v59  ;;  %v973_v29 = vmov 0  }
  0xbf   : > { %v325_v27 = vadd.f32 %v317_v58, %v299_v61  ;;  %v338_v28 = vsel %vm336_vm1, %v333_v22, %v334_v49  ;;  %818 = vset.pattern.permute.xlu0 %v973_v29  ;;  %827 = vpow2.f32 %v741_v40  ;;  %v339_v31 = vsel %vm336_vm1, %v332_v54, %v333_v22  ;;  %820 = vset.pattern.permute.xlu2 %v973_v29 }
  0xc0   : > { %v822_v30 = vpop.eup %821  ;;  %v402_v23 = vadd.f32 %v394_v15, %v327_v17  ;;  %v392_v32 = vmul.f32 %v1180_v44, %v338_v28  ;;  %819 = vset.pattern.permute.xlu1 %v973_v29  ;;  %v324_v36 = vadd.f32 %v316_v33, %v298_v7  ;;  %v337_v37 = vsel %vm336_vm1, %v334_v49, %v335_v8 }
  0xc1   : > { %v428_v34 = vadd.f32 1.0, %v822_v30  ;;  %v391_v35 = vmul.f32 %v1180_v44, %v339_v31  ;;  %v326_v43 = vadd.f32 %v318_v24, %v300_v26  ;;  %v393_v47 = vmul.f32 %v1180_v44, %v337_v37 }
  0xc2   : > { %v824_v41 = vpop.eup %823  ;;  %v400_v46 = vadd.f32 %v392_v32, %v325_v27  ;;  %v748_v48 = vmul.f32 -1.442695, %v402_v23 }
  0xc3   : > { %v429_v42 = vadd.f32 1.0, %v824_v41  ;;  %829 = vrcp.f32 %v428_v34  ;;  %v399_v45 = vadd.f32 %v391_v35, %v324_v36  ;;  %v826_v54 = vpop.eup %825  ;;  %v401_v51 = vadd.f32 %v393_v47, %v326_v43 }
  0xc4   : > { %v746_v39 = vmul.f32 -1.442695, %v400_v46  ;;  %v1256_v25 = vadd.f32 1.0, %v826_v54  ;;  %v459_v60 = vand.u32 2147483647, %v428_v34  ;;  %v461_v62 = vand.u32 2147483648, %v428_v34 }
  0xc5   : > { %831 = vrcp.f32 %v429_v42  ;;  %v745_v33 = vmul.f32 -1.442695, %v399_v45  ;;  %v828_v50 = vpop.eup %827  ;;  %v747_v55 = vmul.f32 -1.442695, %v401_v51  ;;  %v476_v59 = vand.u32 2147483648, %v429_v42 }
  0xc6   : > { %833 = vpow2.f32 %v746_v39  ;;  %v1259_v8 = vadd.f32 1.0, %v828_v50  ;;  %v474_v61 = vand.u32 2147483647, %v429_v42  ;;  %vm455_vm6 = vweird.f32 %v428_v34 }
  0xc7   : > { %835 = vpow2.f32 %v745_v33  ;;  %v462_v24 = vor.u32 1.1754944e-38, %v461_v62  ;;  %vm470_vm8 = vweird.f32 %v429_v42  ;;  %vm460_vm9 = vcmp.eq.f32.partialorder %v459_v60, 8.507059e+37 }
  0xc8   : > { %837 = vpow2.f32 %v748_v48  ;;  %v477_v29 = vor.u32 1.1754944e-38, %v476_v59  ;;  %vm475_vm11 = vcmp.eq.f32.partialorder %v474_v61, 8.507059e+37  ;;  %v491_v41 = vand.u32 2147483648, %v1256_v25 }
  0xc9   : > { %v830_v52 = vpop.eup %829  ;;  %839 = vrcp.f32 %v1256_v25  ;;  %v489_v35 = vand.u32 2147483647, %v1256_v25  ;;  %vm485_vm13 = vweird.f32 %v1256_v25 }
  0xca   : > { %v451_v56 = vmul.f32 %v830_v52, %v428_v34  ;;  %841 = vrcp.f32 %v1259_v8  ;;  %vm456_vm4 = vweird.f32 %v830_v52  ;;  %v492_v47 = vor.u32 1.1754944e-38, %v491_v41 }
  0xcb   : > { %v832_v53 = vpop.eup %831  ;;  %843 = vpow2.f32 %v747_v55  ;;  %vm457_vm7 = vmor %vm455_vm6, %vm456_vm4  ;;  %vm490_vm15 = vcmp.eq.f32.partialorder %v489_v35, 8.507059e+37  ;;  %v444_v41 = vand.u32 2147483647, %v1259_v8 }
  0xcc   : > { %v466_v57 = vmul.f32 %v832_v53, %v429_v42  ;;  %v834_v44 = vpop.eup %833  ;;  %v452_v38 = vsub.f32 1.0, %v451_v56  ;;  %vm471_vm5 = vweird.f32 %v832_v53 }
  0xcd   : > { %v836_v63 = vpop.eup %835  ;;  %v1261_v3 = vadd.f32 1.0, %v834_v44  ;;  %vm472_vm10 = vmor %vm470_vm8, %vm471_vm5 }
  0xce   : > { %v467_v49 = vsub.f32 1.0, %v466_v57  ;;  %v838_v7 = vpop.eup %837  ;;  %v1264_v15 = vadd.f32 1.0, %v836_v63  ;;  %v453_v40 = vmul.f32 %v830_v52, %v452_v38 }
  0xcf   : > { %v840_v16 = vpop.eup %839  ;;  %845 = vrcp.f32 %v1261_v3  ;;  %v1269_v27 = vadd.f32 1.0, %v838_v7  ;;  %vm515_vm2 = vweird.f32 %v1261_v3 }
  0xd0   : > { %v468_v17 = vmul.f32 %v832_v53, %v467_v49  ;;  %847 = vrcp.f32 %v1264_v15  ;;  %v454_v58 = vadd.f32 %v830_v52, %v453_v40  ;;  %v481_v22 = vmul.f32 %v840_v16, %v1256_v25  ;;  %v1271_v23 = vpop.eup %841 }
  0xd1   : > { %v844_v36 = vpop.eup %843  ;;  %vm486_vm12 = vweird.f32 %v840_v16  ;;  %849 = vrcp.f32 %v1269_v27  ;;  %v436_v54 = vmul.f32 %v1271_v23, %v1259_v8  ;;  %v521_v25 = vand.u32 2147483648, %v1261_v3 }
  0xd2   : > { %v469_v26 = vadd.f32 %v832_v53, %v468_v17  ;;  %v458_v28 = vsel %vm457_vm7, %v830_v52, %v454_v58  ;;  %v482_v30 = vsub.f32 1.0, %v481_v22  ;;  %vm487_vm14 = vmor %vm485_vm13, %vm486_vm12  ;;  %v1281_v50 = vadd.f32 1.0, %v844_v36 }
  0xd3   : > { %v463_v31 = vsel %vm460_vm9, %v462_v24, %v458_v28  ;;  %v437_v56 = vsub.f32 1.0, %v436_v54  ;;  %v506_v38 = vand.u32 2147483648, %v1264_v15  ;;  %v504_v60 = vand.u32 2147483647, %v1264_v15 }
  0xd4   : > { %v473_v32 = vsel %vm472_vm10, %v832_v53, %v469_v26  ;;  %562 = vperm.xlu0 %818, %v463_v31   ;;  %v483_v37 = vmul.f32 %v840_v16, %v482_v30  ;;  %v519_v53 = vand.u32 2147483647, %v1261_v3  ;;  %851 = vrcp.f32 %v1281_v50 }
  0xd5   : > { %v478_v34 = vsel %vm475_vm11, %v477_v29, %v473_v32  ;;  %v846_v42 = vpop.eup %845  ;;  %vm500_vm3 = vweird.f32 %v1264_v15  ;;  %v522_v59 = vor.u32 1.1754944e-38, %v521_v25  ;;  %v438_v40 = vmul.f32 %v1271_v23, %v437_v56 }
  0xd6   : > { %567 = vperm.xlu1 %819, %v478_v34   ;;  %v848_v43 = vpop.eup %847  ;;  %v484_v46 = vadd.f32 %v840_v16, %v483_v37  ;;  %v511_v45 = vmul.f32 %v846_v42, %v1261_v3  ;;  %vm516_vm0 = vweird.f32 %v846_v42  ;;  %vm520_vm6 = vcmp.eq.f32.partialorder %v519_v53, 8.507059e+37 }
  0xd7   : > { %v496_v48 = vmul.f32 %v848_v43, %v1264_v15  ;;  %v850_v57 = vpop.eup %849  ;;  %vm501_vm1 = vweird.f32 %v848_v43  ;;  %vm517_vm4 = vmor %vm515_vm2, %vm516_vm0  ;;  %v507_v61 = vor.u32 1.1754944e-38, %v506_v38  ;;  %vm505_vm7 = vcmp.eq.f32.partialorder %v504_v60, 8.507059e+37 }
  0xd8   : > { %v488_v39 = vsel %vm487_vm14, %v840_v16, %v484_v46  ;;  %v512_v33 = vsub.f32 1.0, %v511_v45  ;;  %v541_v63 = vmul.f32 %v850_v57, %v1269_v27  ;;  %vm502_vm5 = vmor %vm500_vm3, %vm501_vm1  ;;  %vm546_vm8 = vweird.f32 %v850_v57 }
  0xd9   : > { %v493_v51 = vsel %vm490_vm15, %v492_v47, %v488_v39  ;;  %v497_v52 = vsub.f32 1.0, %v496_v48  ;;  %vm441_vm9 = vweird.f32 %v1271_v23  ;;  %v551_v15 = vand.u32 2147483648, %v1269_v27 }
  0xda   : > { %572 = vperm.xlu2 %820, %v493_v51   ;;  %v513_v55 = vmul.f32 %v846_v42, %v512_v33  ;;  %v542_v16 = vsub.f32 1.0, %v541_v63  ;;  %v852_v22 = vpop.eup %851  ;;  %v439_v28 = vadd.f32 %v1271_v23, %v438_v40  ;;  %vm545_vm10 = vweird.f32 %v1269_v27 }
  0xdb   : > { %v498_v44 = vmul.f32 %v848_v43, %v497_v52  ;;  %v526_v26 = vmul.f32 %v852_v22, %v1281_v50  ;;  %v549_v30 = vand.u32 2147483647, %v1269_v27  ;;  %v446_v31 = vand.u32 2147483648, %v1259_v8  ;;  %vm547_vm11 = vmor %vm545_vm10, %vm546_vm8 }
  0xdc   : > { %v514_v62 = vadd.f32 %v846_v42, %v513_v55  ;;  %v543_v3 = vmul.f32 %v850_v57, %v542_v16  ;;  %vm440_vm12 = vweird.f32 %v1259_v8  ;;  %v552_v34 = vor.u32 1.1754944e-38, %v551_v15 }
  0xdd   : > { %v499_v49 = vadd.f32 %v848_v43, %v498_v44  ;;  %v527_v32 = vsub.f32 1.0, %v526_v26  ;;  %vm442_vm13 = vmor %vm440_vm12, %vm441_vm9  ;;  %vm550_vm14 = vcmp.eq.f32.partialorder %v549_v30, 8.507059e+37  ;;  %vm445_vm15 = vcmp.eq.f32.partialorder %v444_v41, 8.507059e+37 }
  0xde   : > { %v518_v7 = vsel %vm517_vm4, %v846_v42, %v514_v62  ;;  %v544_v29 = vadd.f32 %v850_v57, %v543_v3  ;;  %v443_v37 = vsel %vm442_vm13, %v1271_v23, %v439_v28  ;;  %v447_v42 = vor.u32 1.1754944e-38, %v446_v31 }
  0xdf   : > { %v503_v17 = vsel %vm502_vm5, %v848_v43, %v499_v49  ;;  %v523_v58 = vsel %vm520_vm6, %v522_v59, %v518_v7  ;;  %v528_v35 = vmul.f32 %v852_v22, %v527_v32  ;;  %vm531_vm0 = vweird.f32 %v852_v22 }
  0xe0   : > { %582 = vperm.xlu1 %819, %v523_v58   ;;  %v508_v24 = vsel %vm505_vm7, %v507_v61, %v503_v17  ;;  %v548_v36 = vsel %vm547_vm11, %v850_v57, %v544_v29  ;;  %v448_v27 = vsel %vm445_vm15, %v447_v42, %v443_v37  ;;  %v536_v45 = vand.u32 2147483648, %v1281_v50 }
  0xe1   : > { %v553_v43 = vsel %vm550_vm14, %v552_v34, %v548_v36  ;;  %v529_v46 = vadd.f32 %v852_v22, %v528_v35  ;;  %vm530_vm1 = vweird.f32 %v1281_v50  ;;  %v534_v8 = vand.u32 2147483647, %v1281_v50 }
  0xe2   : > { %577 = vperm.xlu2 %820, %v508_v24   ;;  %vm532_vm2 = vmor %vm530_vm1, %vm531_vm0  ;;  %v537_v23 = vor.u32 1.1754944e-38, %v536_v45 }
  0xe3   : > { %v533_v54 = vsel %vm532_vm2, %v852_v22, %v529_v46  ;;  %vm535_vm3 = vcmp.eq.f32.partialorder %v534_v8, 8.507059e+37 }
  0xe4   : > { %v538_v47 = vsel %vm535_vm3, %v537_v23, %v533_v54 }
  0xe8   : > { %592 = vperm.xlu1 %819, %v553_v43  }
  0xea   : > { %557 = vperm.xlu2 %820, %v448_v27  }
  0xf2   : > { %587 = vperm.xlu2 %820, %v538_v47  }
 0x134   : > { %v573_v48 = vpop.permute.xlu2 %572 }
 0x135   : > { %v601_v39 = vmul.f32 %v573_v48, %v1105_v0  ;;  %v602_v33 = vmul.f32 %v573_v48, %v1108_v1 }
 0x137   : > { %617 = vst [vmem:[%s1309_s5 + $0x30] sm:$0xff] %v601_v39 }
 0x138   : > { %618 = vst [vmem:[%s1309_s5 + $0x38] sm:$0xff] %v602_v33 }
 0x13c   : > { %v578_v50 = vpop.permute.xlu2 %577 }
 0x13d   : > { %v603_v51 = vmul.f32 %v578_v50, %v1129_v9  ;;  %v604_v0 = vmul.f32 %v578_v50, %v1132_v10 }
 0x13f   : > { %619 = vst [vmem:[%s1309_s5 + $0x40] sm:$0xff] %v603_v51 }
 0x140   : > { %620 = vst [vmem:[%s1309_s5 + $0x48] sm:$0xff] %v604_v0 }
 0x144   : > { %v558_v1 = vpop.permute.xlu2 %557 }
 0x145   : > { %v595_v52 = vmul.f32 %v558_v1, %v1119_v5  ;;  %v596_v53 = vmul.f32 %v558_v1, %v1122_v6 }
 0x146   : > { %v563_v25 = vpop.permute.xlu0 %562 }
 0x147   : > { %611 = vst [vmem:[%s1309_s5] sm:$0xff] %v595_v52  ;;  %v597_v55 = vmul.f32 %v563_v25, %v1111_v2  ;;  %v598_v9 = vmul.f32 %v563_v25, %v1116_v4 }
 0x148   : > { %v568_v56 = vpop.permute.xlu1 %567  ;;  %612 = vst [vmem:[%s1309_s5 + $0x8] sm:$0xff] %v596_v53 }
 0x149   : > { %v599_v10 = vmul.f32 %v568_v56, %v1135_v11  ;;  %v600_v57 = vmul.f32 %v568_v56, %v1138_v12  ;;  %613 = vst [vmem:[%s1309_s5 + $0x10] sm:$0xff] %v597_v55 }
 0x14a   : > { %614 = vst [vmem:[%s1309_s5 + $0x18] sm:$0xff] %v598_v9 }
 0x14b   : > { %615 = vst [vmem:[%s1309_s5 + $0x20] sm:$0xff] %v599_v10 }
 0x14c   : > { %616 = vst [vmem:[%s1309_s5 + $0x28] sm:$0xff] %v600_v57  ;;  %v588_v5 = vpop.permute.xlu2 %587 }
 0x14d   : > { %v607_v6 = vmul.f32 %v588_v5, %v1153_v18  ;;  %v608_v2 = vmul.f32 %v588_v5, %v1156_v19 }
 0x14f   : > { %623 = vst [vmem:[%s1309_s5 + $0x60] sm:$0xff] %v607_v6 }
 0x150   : > { %624 = vst [vmem:[%s1309_s5 + $0x68] sm:$0xff] %v608_v2 }
 0x152   : > { %v583_v4 = vpop.permute.xlu1 %582 }
 0x153   : > { %v605_v11 = vmul.f32 %v583_v4, %v1159_v20  ;;  %v606_v12 = vmul.f32 %v583_v4, %v1162_v21 }
 0x155   : > { %621 = vst [vmem:[%s1309_s5 + $0x50] sm:$0xff] %v605_v11 }
 0x156   : > { %622 = vst [vmem:[%s1309_s5 + $0x58] sm:$0xff] %v606_v12 }
 0x15a   : > { %v593_v18 = vpop.permute.xlu1 %592 }
 0x15b   : > { %v609_v19 = vmul.f32 %v593_v18, %v1141_v13  ;;  %v610_v44 = vmul.f32 %v593_v18, %v1144_v14 }
 0x15d   : > { %625 = vst [vmem:[%s1309_s5 + $0x70] sm:$0xff] %v609_v19 }
 0x15e   : > { %626 = vst [vmem:[%s1309_s5 + $0x78] sm:$0xff] %v610_v44 }
 0x15f   : > { %925 = shalt.err (!%p922_p8)
}
 0x160   : > { %s974_s4 = smov 256   ;;  %s975_s8 = smov 16  }
 0x161   : > { %762 = dma.vmem_to_hbm [thread:$0]  (%p1043_p11), %s641_s24, 2048, %s643_s25, %s628_s13, %s974_s4, %s974_s4, %s975_s8  }
 0x162 PF: > { %s657_s20 = sand.u32 1, %s956_s9   ;;  %p1384_p9 = scmp.ge.s32.totalorder %s968_s12, 2 }
 0x163   : > { %s658_s23 = scalar_lea.sflag [#allocation4], %s657_s20 }
 0x164   : > { %p773_p10 = pnand %p1384_p9, %p1047_p12 }
 0x166   : > { %p774_p1 = pneg %p773_p10 }
 0x168   : > { %951 = dma.done.wait (%p774_p1), %s658_s23, 2048  }
 0x169   : > { %953 = vsyncadd (%p774_p1), %s658_s23, 4294965248  ;;  %p16_p2 = scmp.ge.s32.totalorder %s1016_s15, 4   ;;  %s1385_s9 = smov %s960_s10 }
 0x16a   : > { %s1386_s10 = smov %s964_s11  ;;  %s1387_s11 = smov %s1028_s18 }
 0x16b   : > { %s1388_s12 = smov %s1016_s15  ;;  %18 = sbr.rel (!%p16_p2) target bundleno = 6 (0x6), region = 78 }
 0x170   :  { %664 = vsyncpa [#allocation3], 1 }
 0x171   :  { %666 = vsyncpa [#allocation3 + $0x1], 1 }
 0x172   :  { %667 = vsyncpa [#allocation4], 1 }
 0x173   :  { %669 = vsyncpa [#allocation4 + $0x1], 1 }
 0x174   :  { %670 = vsyncpa [#allocation5], 1 }
 0x175   :  { %672 = vsyncpa [#allocation5 + $0x1], 1 }

</bundles_post_ra>
